<compile_context>
chip_gen: v7x
topology: tpu7x:2x2x1
jax: 0.10.0
libtpu: 0.0.40
codegen_flags: <defaults>
</compile_context>

<pallas_src>
import functools

import jax
import jax.numpy as jnp
from jax.experimental import pallas as pl
from jax.experimental.pallas import tpu as pltpu


def _vlu_kernel(x_ref, o_ref, *, a, b):
    x = x_ref[...]
    xf = x.astype(jnp.float32)  # no-op for f32 inputs; upcast keeps sin accurate
    o_ref[...] = (jnp.maximum(xf, 0.0) + a * jnp.sin(b * xf)).astype(o_ref.dtype)


def _tensorcore_count() -> int:
    # v7x has 2 TensorCores per chip; v5e/v6e have 1.  Best-effort detection:
    # a wrong answer only changes the grid-shaping heuristic, never correctness.
    try:
        kind = (jax.devices()[0].device_kind or "").lower()
    except Exception:
        return 1
    return 2 if "v7" in kind else 1


def vlu(x, a: float = 1.0, b: float = 1.0, *, block_rows: int = 16384):
    """Element-wise VLU(x) = max(x, 0) + a*sin(b*x).  Matches torch VLU forward."""
    a = float(a)
    b = float(b)
    orig_shape = x.shape
    dtype = x.dtype
    n = x.size
    if n == 0:
        return x

    lanes = 128
    itemsize = jnp.dtype(dtype).itemsize
    # Sublane packing: f32 -> 8 rows, bf16/f16 -> 16, int8/fp8 -> 32.
    sub = max(8, 32 // max(itemsize, 1))

    rows = pl.cdiv(n, lanes)
    n_lane_padded = rows * lanes
    needs_pad = n_lane_padded != n

    x_flat = jnp.ravel(x)
    if needs_pad:
        # <= 127 elements of pad; allow_input_fusion lets XLA fuse this into the
        # pallas_call input rather than materializing a padded HBM copy.
        x_flat = jnp.pad(x_flat, (0, n_lane_padded - n))
    x2d = x_flat.reshape(rows, lanes)

    n_tc = _tensorcore_count()
    fits_one_block = rows <= block_rows
    tiny = n * itemsize <= (256 << 10)  # latency path: splitting costs more than it gains

    if fits_one_block and (n_tc == 1 or tiny):
        # Single grid step; block equals the full array dims so no (8,128)
        # divisibility is required.
        br = rows
        grid_m = 1
    else:
        # Balanced blocks, count a multiple of the TensorCore count so both
        # v7x cores get ~equal work; rounded to the sublane-packing multiple.
        n_blocks = n_tc * pl.cdiv(rows, n_tc * block_rows)
        br = min(rows, pl.cdiv(pl.cdiv(rows, n_blocks), sub) * sub)
        grid_m = pl.cdiv(rows, br)

    block_bytes = br * lanes * itemsize
    # in x2 (double buffer) + out x2, plus slack; capped for v7x's 64 MiB VMEM.
    vmem_limit = int(min(4 * block_bytes + (8 << 20), 48 << 20))

    kernel = functools.partial(_vlu_kernel, a=a, b=b)

    out2d = pl.pallas_call(
        kernel,
        out_shape=jax.ShapeDtypeStruct((rows, lanes), dtype),
        grid_spec=pltpu.PrefetchScalarGridSpec(
            num_scalar_prefetch=0,
            grid=(grid_m,),
            in_specs=[pl.BlockSpec((br, lanes), lambda i: (i, 0))],
            out_specs=pl.BlockSpec((br, lanes), lambda i: (i, 0)),
        ),
        compiler_params=pltpu.CompilerParams(
            dimension_semantics=("parallel",),
            vmem_limit_bytes=vmem_limit,
            allow_input_fusion=[True] if needs_pad else None,
        ),
    )(x2d)

    out_flat = out2d.reshape(-1)
    if needs_pad:
        out_flat = out_flat[:n]
    return out_flat.reshape(orig_shape)


if __name__ == "__main__":
    key = jax.random.PRNGKey(0)

    # 1) Module-shaped input (batch=2, channels=4, 16x16), lane-aligned fast path.
    x = jax.random.normal(key, (2, 4, 16, 16), dtype=jnp.float32)
    a, b = 1.0, 1.0
    out = jax.block_until_ready(vlu(x, a=a, b=b))
    ref = jnp.maximum(x, 0) + a * jnp.sin(b * x)
    assert out.shape == x.shape and out.dtype == x.dtype
    assert jnp.allclose(out, ref, atol=1e-5, rtol=1e-5)

    # 2) Unaligned size (n % 128 != 0): exercises the pad + slice path.
    x2 = jax.random.normal(jax.random.PRNGKey(1), (3, 5, 7), dtype=jnp.float32)
    out2 = jax.block_until_ready(vlu(x2, a=0.5, b=2.0))
    ref2 = jnp.maximum(x2, 0) + 0.5 * jnp.sin(2.0 * x2)
    assert out2.shape == x2.shape
    assert jnp.allclose(out2, ref2, atol=1e-5, rtol=1e-5)

    # 3) Multi-block grid (partial last block masked by Pallas).
    x3 = jax.random.normal(jax.random.PRNGKey(2), (300, 256), dtype=jnp.float32)
    out3 = jax.block_until_ready(vlu(x3, a=1.5, b=0.5, block_rows=256))
    ref3 = jnp.maximum(x3, 0) + 1.5 * jnp.sin(0.5 * x3)
    assert out3.shape == x3.shape
    assert jnp.allclose(out3, ref3, atol=1e-5, rtol=1e-5)

    print("KERNEL_OK")
</pallas_src>

<mosaic_0001>
module attributes {stable_mosaic.version = 11 : i64} {
  func.func @_vlu_kernel(%arg0: i32, %arg1: memref<16x128xf32, #tpu.memory_space<vmem>>, %arg2: memref<16x128xf32, #tpu.memory_space<vmem>>) attributes {dimension_semantics = [#tpu.dimension_semantics<parallel>], iteration_bounds = array<i64: 1>, scalar_prefetch = 0 : i64, scratch_operands = 0 : i64, tpu.core_type = #tpu.core_type<tc>, window_params = [{transform_indices = @transform_0, window_bounds = array<i64: 16, 128>}, {transform_indices = @transform_1, window_bounds = array<i64: 16, 128>}]} {
    %c0 = arith.constant 0 : index
    %c0_0 = arith.constant 0 : index
    %0 = vector.load %arg1[%c0, %c0_0] : memref<16x128xf32, #tpu.memory_space<vmem>>, vector<16x128xf32>
    %cst = arith.constant 0.000000e+00 : f32
    %1 = vector.broadcast %cst : f32 to vector<16x128xf32>
    %2 = arith.maximumf %0, %1 : vector<16x128xf32>
    %cst_1 = arith.constant 1.000000e+00 : f32
    %3 = vector.broadcast %cst_1 : f32 to vector<16x128xf32>
    %4 = arith.mulf %3, %0 : vector<16x128xf32>
    %5 = math.sin %4 : vector<16x128xf32>
    %cst_2 = arith.constant 1.000000e+00 : f32
    %6 = vector.broadcast %cst_2 : f32 to vector<16x128xf32>
    %7 = arith.mulf %6, %5 : vector<16x128xf32>
    %8 = arith.addf %2, %7 : vector<16x128xf32>
    %c0_3 = arith.constant 0 : index
    %c0_4 = arith.constant 0 : index
    %9 = vector.load %arg2[%c0_3, %c0_4] : memref<16x128xf32, #tpu.memory_space<vmem>>, vector<16x128xf32>
    tpu.vector_store %arg2[%c0_3, %c0_4], %8 {strides = array<i32>} : memref<16x128xf32, #tpu.memory_space<vmem>>, vector<16x128xf32>,
    return
  }
  func.func @transform_0(%arg0: i32) -> (i32, i32) {
    %c0_i32 = arith.constant 0 : i32
    %c0_i32_0 = arith.constant 0 : i32
    return %arg0, %c0_i32 : i32, i32
  }
  func.func @transform_1(%arg0: i32) -> (i32, i32) {
    %c0_i32 = arith.constant 0 : i32
    %c0_i32_0 = arith.constant 0 : i32
    return %arg0, %c0_i32 : i32, i32
  }
}

</mosaic_0001>

<bundles_post_ra>
// kernel: tpu_custom_call.1
= control target key start
LH: loop header
LB: loop body
LE: loop exit
PB: predicated region body
PF: predicated region fallthrough
CT: control target
= control target key end

     0   :  { %6 = vsyncpa [#allocation3], 0  ;;  %s465_s0 = inlined_call_operand.hbm [shape: f32[16,128], index: 0, kind: input, shape index: {}]   ;;  %s466_s1 = inlined_call_operand.hbm [shape: f32[16,128], index: 1, kind: output, shape index: {}]  }
   0x1   :  { %7 = vsyncpa [#allocation4], 0  ;;  %s338_s6 = smov [#allocation2]   ;;  %s290_s10 = scalar_lea.hbm %s465_s0, 256 }
   0x2   :  { %s13_s7 = sshll.u32 %s338_s6, 4  ;;  %p291_p0 = scmp.ne.s32.totalorder %s465_s0, %s290_s10  ;;  %s14_s7 = int_to_ptr.vmem [resolvable:$true] %s13_s7 }
   0x3   :  { %p294_p1 = scmp.lt.u32.totalorder %s290_s10, %s465_s0 }
   0x5   :  { %p296_p2 = pnand %p294_p1, %p291_p0 }
   0x7   :  { %299 = shalt.err (!%p296_p2)
}
   0x8   :  { %s300_s15 = scalar_lea.vmem %s14_s7, 256  ;;  %p305_p4 = scmp.lt.s32.totalorder %s14_s7, %s14_s7 }
   0x9   :  { %p301_p3 = scmp.ne.s32.totalorder %s14_s7, %s300_s15  ;;  %p306_p5 = scmp.lt.s32.totalorder %s300_s15, %s300_s15 }
   0xb   :  { %p307_p6 = por %p306_p5, %p305_p4 }
   0xd   :  { %p308_p7 = pnand %p307_p6, %p301_p3 }
   0xf   :  { %311 = shalt.err (!%p308_p7)
}
  0x10   :  { %s339_s16 = smov 128   ;;  %s340_s17 = smov 8  }
  0x11   :  { %19 = dma.hbm_to_vmem [thread:$0]  %s465_s0, 256, %s14_s7, [#allocation3], %s339_s16, %s339_s16, %s340_s17  }
  0x12   :  { %334 = dma.done.wait [#allocation3], 256  }
  0x13   :  { %335 = vsyncadd [#allocation3], 4294967040  ;;  %v373_v0 = vld [vmem:[#allocation2] sm:$0xff]  ;;  %v375_v1 = vld [vmem:[#allocation2 + $0x8] sm:$0xff]  ;;  %v341_v21 = vmov 683565275  }
  0x14   :  { %v27_v2 = vand.u32 2147483647, %v373_v0  ;;  %v30_v3 = vand.u32 2139095040, %v373_v0  ;;  %v134_v5 = vand.u32 2139095040, %v375_v1  ;;  %v131_v7 = vand.u32 2147483647, %v375_v1 }
  0x15   :  { %v342_v23 = vmov 2475754826   ;;  %v343_v25 = vmov 2131351028   ;;  %v344_v27 = vmov 2102212464  }
  0x16   :  { %v31_v4 = vshrl.u32 %v30_v3, 23  ;;  %v34_v6 = vand.u32 8388607, %v27_v2  ;;  %v135_v9 = vshrl.u32 %v134_v5, 23  ;;  %v385_v13 = vand.u32 8388607, %v131_v7 }
  0x17   :  { %v345_v29 = vmov 920167782   ;;  %v346_v37 = vmov 1326507024   ;;  %vm29_vm14 = vcmp.lt.s32.totalorder %v373_v0, 0  ;;  %s347_s0 = smov [#allocation5]  }
  0x18   :  { %v256_v8 = vadd.s32 4294967169, %v31_v4  ;;  %v260_v11 = vadd.s32 4294967169, %v135_v9  ;;  %v35_v12 = vor.u32 8388608, %v34_v6  ;;  %v139_v19 = vor.u32 8388608, %v385_v13  ;;  %s244_s20 = sshll.u32 %s347_s0, 4  ;;  %s245_s20 = int_to_ptr.vmem [resolvable:$true] %s244_s20 }
  0x19   :  { %vm28_vm15 = vcmp.le.f32.partialorder %v27_v2, 0.7853982  ;;  %s312_s21 = scalar_lea.vmem %s245_s20, 256  ;;  %p317_p9 = scmp.lt.s32.totalorder %s245_s20, %s245_s20 }
  0x1a   :  { %v37_v10 = vadd.s32 1, %v256_v8  ;;  %v141_v14 = vadd.s32 1, %v260_v11  ;;  %v387_v18 = vshll.u32 %v35_v12, 8  ;;  %p313_p8 = scmp.ne.s32.totalorder %s245_s20, %s312_s21  ;;  %p318_p10 = scmp.lt.s32.totalorder %s312_s21, %s312_s21 }
  0x1c   :  { %vm38_vm0 = vcmp.gt.s32.totalorder %v37_v10, 0  ;;  %vm142_vm1 = vcmp.gt.s32.totalorder %v141_v14, 0  ;;  %p319_p11 = por %p318_p10, %p317_p9 }
  0x1d   :  { %v39_v15 = vsel %vm38_vm0, %v37_v10, 0  ;;  %v143_v31 = vsel %vm142_vm1, %v141_v14, 0  ;;  %vm133_vm0 = vcmp.lt.s32.totalorder %v375_v1, 0  ;;  %vm437_vm1 = vcmp.le.f32.partialorder %v131_v7, 0.7853982 }
  0x1e   :  { %v40_v16 = vshrl.u32 %v39_v15, 5  ;;  %v41_v17 = vand.u32 31, %v39_v15  ;;  %v144_v44 = vshrl.u32 %v143_v31, 5  ;;  %v145_v45 = vand.u32 31, %v143_v31  ;;  %p320_p12 = pnand %p319_p11, %p313_p8 }
  0x20   :  { %v42_v20 = vsub.s32 32, %v41_v17  ;;  %v44_v22 = vshll.u32 %v341_v21, %v41_v17  ;;  %v47_v24 = vshll.u32 %v342_v23, %v41_v17  ;;  %v50_v26 = vshll.u32 %v343_v25, %v41_v17 }
  0x21   :  { %v53_v28 = vshll.u32 %v344_v27, %v41_v17  ;;  %v56_v30 = vshll.u32 %v345_v29, %v41_v17  ;;  %vm59_vm2 = vcmp.lt.s32.totalorder %v40_v16, 1  ;;  %vm60_vm3 = vcmp.lt.s32.totalorder %v40_v16, 2 }
  0x22   :  { %v43_v32 = vshrl.u32 %v341_v21, %v42_v20  ;;  %v45_v33 = vshrl.u32 %v342_v23, %v42_v20  ;;  %v48_v34 = vshrl.u32 %v343_v25, %v42_v20  ;;  %v51_v35 = vshrl.u32 %v344_v27, %v42_v20 }
  0x23   :  { %v54_v36 = vshrl.u32 %v345_v29, %v42_v20  ;;  %v57_v38 = vshrl.u32 %v346_v37, %v42_v20  ;;  %vm61_vm4 = vcmp.lt.s32.totalorder %v40_v16, 3  ;;  %vm62_vm5 = vcmp.lt.s32.totalorder %v40_v16, 4 }
  0x24   :  { %v46_v39 = vor.u32 %v45_v33, %v44_v22  ;;  %v49_v40 = vor.u32 %v48_v34, %v47_v24  ;;  %v52_v41 = vor.u32 %v51_v35, %v50_v26  ;;  %v146_v53 = vsub.s32 32, %v145_v45 }
  0x25   :  { %v55_v42 = vor.u32 %v54_v36, %v53_v28  ;;  %v58_v43 = vor.u32 %v57_v38, %v56_v30  ;;  %v148_v57 = vshll.u32 %v341_v21, %v145_v45  ;;  %v151_v6 = vshll.u32 %v342_v23, %v145_v45 }
  0x26   :  { %v63_v46 = vsel %vm59_vm2, %v43_v32, %v46_v39  ;;  %v64_v47 = vsel %vm62_vm5, %v52_v41, 2102212464  ;;  %v67_v48 = vsel %vm59_vm2, %v46_v39, %v49_v40  ;;  %v71_v49 = vsel %vm59_vm2, %v49_v40, %v52_v41 }
  0x27   :  { %v65_v50 = vsel %vm61_vm4, %v49_v40, %v64_v47  ;;  %v68_v51 = vsel %vm62_vm5, %v55_v42, 920167782  ;;  %v72_v52 = vsel %vm62_vm5, %v58_v43, 1326507024  ;;  %v147_v61 = vshrl.u32 %v341_v21, %v146_v53 }
  0x28   :  { %v66_v54 = vsel %vm60_vm3, %v63_v46, %v65_v50  ;;  %v69_v55 = vsel %vm61_vm4, %v52_v41, %v68_v51  ;;  %v73_v56 = vsel %vm61_vm4, %v55_v42, %v72_v52  ;;  %v149_v5 = vshrl.u32 %v342_v23, %v146_v53 }
  0x29   :  { %v70_v58 = vsel %vm60_vm3, %v67_v48, %v69_v55  ;;  %v74_v59 = vsel %vm60_vm3, %v71_v49, %v73_v56  ;;  %v82_v60 = vmul.u32 %v387_v18, %v66_v54  ;;  %v152_v8 = vshrl.u32 %v343_v25, %v146_v53 }
  0x2a   :  { %v401_v62 = vmul.u32.u64.low %v387_v18, %v74_v59  ;;  %v402_v63 = vmul.u32.u64.high %v387_v18, %v74_v59, %v401_v62  ;;  %v405_v3 = vmul.u32.u64.low %v387_v18, %v70_v58  ;;  %v406_v4 = vmul.u32.u64.high %v387_v18, %v70_v58, %v405_v3 }
  0x2b   :  { %v154_v9 = vshll.u32 %v343_v25, %v145_v45  ;;  %v155_v10 = vshrl.u32 %v344_v27, %v146_v53  ;;  %v157_v11 = vshll.u32 %v344_v27, %v145_v45  ;;  %v158_v12 = vshrl.u32 %v345_v29, %v146_v53 }
  0x2c   :  { %v160_v14 = vshll.u32 %v345_v29, %v145_v45  ;;  %v150_v15 = vor.u32 %v149_v5, %v148_v57  ;;  %v153_v16 = vor.u32 %v152_v8, %v151_v6  ;;  %v161_v17 = vshrl.u32 %v346_v37, %v146_v53 }
  0x2d   :  { %vm163_vm6 = vcmp.lt.s32.totalorder %v144_v44, 1  ;;  %vm84_vm7 = vc.u32 %v402_v63, %v405_v3  ;;  %v85_v20 = vadd.s32 1, %v406_v4  ;;  %v156_v21 = vor.u32 %v155_v10, %v154_v9 }
  0x2e   :  { %v179_v18 = vshll.u32 %v139_v19, 8  ;;  %v159_v22 = vor.u32 %v158_v12, %v157_v11  ;;  %v162_v23 = vor.u32 %v161_v17, %v160_v14  ;;  %vm164_vm8 = vcmp.lt.s32.totalorder %v144_v44, 2 }
  0x2f   :  { %vm165_vm9 = vcmp.lt.s32.totalorder %v144_v44, 3  ;;  %v86_v24 = vsel %vm84_vm7, %v85_v20, %v406_v4  ;;  %vm166_vm10 = vcmp.lt.s32.totalorder %v144_v44, 4  ;;  %v167_v25 = vsel %vm163_vm6, %v147_v61, %v150_v15 }
  0x30   :  { %v171_v26 = vsel %vm163_vm6, %v150_v15, %v153_v16  ;;  %v87_v27 = vadd.s32 %v86_v24, %v82_v60  ;;  %v168_v28 = vsel %vm166_vm10, %v156_v21, 2102212464  ;;  %v172_v29 = vsel %vm166_vm10, %v159_v22, 920167782 }
  0x31   :  { %v175_v30 = vsel %vm163_vm6, %v153_v16, %v156_v21  ;;  %v169_v31 = vsel %vm165_vm9, %v153_v16, %v168_v28  ;;  %v173_v32 = vsel %vm165_vm9, %v156_v21, %v172_v29  ;;  %v176_v13 = vsel %vm166_vm10, %v162_v23, 1326507024 }
  0x32   :  { %v88_v19 = vadd.s32 536870912, %v87_v27  ;;  %v174_v33 = vsel %vm164_vm8, %v171_v26, %v173_v32  ;;  %v177_v34 = vsel %vm165_vm9, %v159_v22, %v176_v13  ;;  %v170_v35 = vsel %vm164_vm8, %v167_v25, %v169_v31 }
  0x33   :  { %v178_v36 = vsel %vm164_vm8, %v175_v30, %v177_v34  ;;  %v419_v37 = vmul.u32.u64.low %v179_v18, %v174_v33  ;;  %v420_v38 = vmul.u32.u64.high %v179_v18, %v174_v33, %v419_v37  ;;  %v186_v43 = vmul.u32 %v179_v18, %v170_v35 }
  0x34   :  { %v89_v39 = vshrl.u32 %v88_v19, 30  ;;  %v422_v40 = vmul.u32.u64.low %v179_v18, %v178_v36  ;;  %v423_v41 = vmul.u32.u64.high %v179_v18, %v178_v36, %v422_v40  ;;  %v83_v55 = vadd.s32 %v405_v3, %v402_v63 }
  0x35   :  { %v189_v45 = vadd.s32 1, %v420_v38  ;;  %vm119_vm5 = vweird.f32 %v373_v0  ;;  %vm223_vm9 = vweird.f32 %v375_v1 }
  0x36   :  { %v90_v42 = vshll.u32 %v89_v39, 30  ;;  %vm188_vm11 = vc.u32 %v423_v41, %v419_v37  ;;  %v113_v15 = vsub.s32 4, %v89_v39  ;;  %v187_v63 = vadd.s32 %v419_v37, %v423_v41 }
  0x37   :  { %v190_v47 = vsel %vm188_vm11, %v189_v45, %v420_v38 }
  0x38   :  { %v91_v46 = vsub.s32 %v87_v27, %v90_v42  ;;  %v191_v49 = vadd.s32 %v190_v47, %v186_v43  ;;  %v114_v22 = vsel %vm29_vm14, %v113_v15, %v89_v39  ;;  %v25_v43 = vmax.f32 %v373_v0, 0.0 }
  0x39   :  { %v116_v27 = vsel %vm28_vm15, 0, %v114_v22 }
  0x3a   :  { %v93_v48 = vsub.s32 0, %v91_v46  ;;  %v192_v50 = vadd.s32 536870912, %v191_v49  ;;  %v120_v32 = vadd.s32 3, %v116_v27 }
  0x3c   :  { %v257_v44 = vmin.u32 %v93_v48, %v91_v46  ;;  %v193_v52 = vshrl.u32 %v192_v50, 30  ;;  %v121_v34 = vand.u32 3, %v120_v32 }
  0x3e   :  { %v95_v51 = vclz %v257_v44  ;;  %v194_v54 = vshll.u32 %v193_v52, 30  ;;  %v217_v19 = vsub.s32 4, %v193_v52  ;;  %vm126_vm2 = vcmp.eq.s32.totalorder %v121_v34, 2 }
  0x3f   :  { %vm123_vm3 = vcmp.eq.s32.totalorder %v121_v34, 0  ;;  %vm122_vm4 = vcmp.lt.s32.totalorder %v121_v34, 2 }
  0x40   :  { %v258_v53 = vadd.s32 4294967294, %v95_v51  ;;  %v195_v57 = vsub.s32 %v191_v49, %v194_v54  ;;  %v218_v36 = vsel %vm133_vm0, %v217_v19, %v193_v52 }
  0x41   :  { %v220_v40 = vsel %vm437_vm1, 0, %v218_v36 }
  0x42   :  { %vm259_vm12 = vcmp.lt.s32.totalorder %v258_v53, 0  ;;  %v197_v61 = vsub.s32 0, %v195_v57 }
  0x43   :  { %v98_v56 = vsel %vm259_vm12, 0, %v258_v53 }
  0x44   :  { %v99_v58 = vsub.s32 32, %v98_v56  ;;  %v100_v59 = vshll.u32 %v91_v46, %v98_v56  ;;  %v103_v60 = vsub.s32 4294967266, %v98_v56  ;;  %v261_v5 = vmin.u32 %v197_v61, %v195_v57 }
  0x45   :  { %v224_v46 = vadd.s32 3, %v220_v40 }
  0x46   :  { %v101_v62 = vshrl.u32 %v83_v55, %v99_v58  ;;  %v104_v4 = vadd.s32 127, %v103_v60  ;;  %v199_v9 = vclz %v261_v5  ;;  %v26_v55 = vmax.f32 %v375_v1, 0.0 }
  0x47   :  { %v225_v50 = vand.u32 3, %v224_v46 }
  0x48   :  { %v102_v6 = vor.u32 %v101_v62, %v100_v59  ;;  %v105_v8 = vshll.u32 %v104_v4, 23  ;;  %v262_v12 = vadd.s32 4294967294, %v199_v9 }
  0x49   :  { %vm230_vm6 = vcmp.eq.s32.totalorder %v225_v50, 2  ;;  %vm227_vm7 = vcmp.eq.s32.totalorder %v225_v50, 0  ;;  %vm226_vm8 = vcmp.lt.s32.totalorder %v225_v50, 2 }
  0x4a   :  { %v106_v10 = vor.u32 4788187, %v105_v8  ;;  %v109_v11 = vcvt.s32.f32 %v102_v6  ;;  %vm263_vm13 = vcmp.lt.s32.totalorder %v262_v12, 0 }
  0x4b   :  { %v202_v16 = vsel %vm263_vm13, 0, %v262_v12 }
  0x4c   :  { %v107_v14 = vand.u32 2147483647, %v106_v10  ;;  %v203_v17 = vsub.s32 32, %v202_v16  ;;  %v204_v20 = vshll.u32 %v195_v57, %v202_v16  ;;  %v207_v21 = vsub.s32 4294967266, %v202_v16 }
  0x4e   :  { %v110_v3 = vmul.f32 %v109_v11, %v107_v14  ;;  %v205_v23 = vshrl.u32 %v187_v63, %v203_v17  ;;  %v208_v24 = vadd.s32 127, %v207_v21 }
  0x50   :  { %v111_v18 = vxor.u32 2147483648, %v110_v3  ;;  %v206_v28 = vor.u32 %v205_v23, %v204_v20  ;;  %v209_v29 = vshll.u32 %v208_v24, 23 }
  0x52   :  { %v112_v25 = vsel %vm29_vm14, %v111_v18, %v110_v3  ;;  %v210_v30 = vor.u32 4788187, %v209_v29  ;;  %v213_v31 = vcvt.s32.f32 %v206_v28 }
  0x53   :  { %v115_v26 = vsel %vm28_vm15, %v373_v0, %v112_v25 }
  0x54   :  { %282 = vcosq.f32 %v115_v26  ;;  %v211_v13 = vand.u32 2147483647, %v210_v30 }
  0x55   :  { %284 = vsinq.f32 %v115_v26 }
  0x56   :  { %v214_v33 = vmul.f32 %v213_v31, %v211_v13 }
  0x58   :  { %v215_v35 = vxor.u32 2147483648, %v214_v33 }
  0x5a   :  { %v216_v37 = vsel %vm133_vm0, %v215_v35, %v214_v33 }
  0x5b   :  { %v219_v39 = vsel %vm437_vm1, %v375_v1, %v216_v37 }
  0x5c   :  { %286 = vcosq.f32 %v219_v39 }
  0x5d   :  { %288 = vsinq.f32 %v219_v39 }
  0x5e   :  { %v283_v38 = vpop.eup %282 }
  0x5f   :  { %v285_v41 = vpop.eup %284  ;;  %v127_v42 = vxor.u32 2147483648, %v283_v38 }
  0x60   :  { %v124_v7 = vxor.u32 2147483648, %v285_v41 }
  0x61   :  { %v128_v45 = vsel %vm126_vm2, %v127_v42, %v285_v41 }
  0x62   :  { %v125_v47 = vsel %vm123_vm3, %v283_v38, %v124_v7 }
  0x63   :  { %v129_v48 = vsel %vm122_vm4, %v125_v47, %v128_v45 }
  0x64   :  { %v130_v49 = vsel %vm119_vm5, nan, %v129_v48 }
  0x65   :  { %v235_v44 = vadd.f32 %v130_v49, %v25_v43 }
  0x66   :  { %v287_v51 = vpop.eup %286 }
  0x67   :  { %237 = vst [vmem:[#allocation5] sm:$0xff] %v235_v44  ;;  %v289_v52 = vpop.eup %288  ;;  %v231_v53 = vxor.u32 2147483648, %v287_v51 }
  0x68   :  { %v228_v54 = vxor.u32 2147483648, %v289_v52 }
  0x69   :  { %v232_v0 = vsel %vm230_vm6, %v231_v53, %v289_v52 }
  0x6a   :  { %v229_v56 = vsel %vm227_vm7, %v287_v51, %v228_v54 }
  0x6b   :  { %v233_v57 = vsel %vm226_vm8, %v229_v56, %v232_v0 }
  0x6c   :  { %v234_v58 = vsel %vm223_vm9, nan, %v233_v57 }
  0x6d   :  { %v236_v59 = vadd.f32 %v234_v58, %v26_v55 }
  0x6f   :  { %238 = vst [vmem:[#allocation5 + $0x8] sm:$0xff] %v236_v59 }
  0x70   :  { %323 = shalt.err (!%p320_p12)
}
  0x71   :  { %s324_s24 = scalar_lea.hbm %s466_s1, 256 }
  0x72   :  { %p325_p13 = scmp.ne.s32.totalorder %s466_s1, %s324_s24  ;;  %p328_p0 = scmp.lt.u32.totalorder %s324_s24, %s466_s1 }
  0x74   :  { %p330_p1 = pnand %p328_p0, %p325_p13 }
  0x76   :  { %333 = shalt.err (!%p330_p1)
}
  0x77   :  { %250 = dma.vmem_to_hbm [thread:$0]  %s245_s20, 256, %s466_s1, [#allocation4], %s339_s16, %s339_s16, %s340_s17  }
  0x78   :  { %336 = dma.done.wait [#allocation4], 256  }
  0x79   :  { %337 = vsyncadd [#allocation4], 4294967040 }
  0x7a   :  { %254 = vsyncpa [#allocation3], 1 }
  0x7b   :  { %255 = vsyncpa [#allocation4], 1 }

</bundles_post_ra>
